<compile_context>
chip_gen: v6e
topology: v6e:2x2x1
jax: 0.10.0
libtpu: 0.0.40
codegen_flags: <defaults>
</compile_context>

<pallas_src>
import jax
import jax.numpy as jnp
from jax.experimental import pallas as pl
from jax.experimental.pallas import tpu as pltpu


# ----------------------------- configuration -----------------------------
BATCH = 8
INPUT_SIZE = 8                        # backcast length
FORECAST_SIZE = 4                     # forecast length
OUT_FEATURES = 1                      # IdentityBasis out_features
FORE_FLAT = FORECAST_SIZE * OUT_FEATURES
N_THETA = INPUT_SIZE + FORE_FLAT
MLP_UNITS = [[32, 32], [32, 32]]
DROPOUT_PROB = 0.0                    # dropout > 0 raises in the PyTorch reference

LANES = 128                           # hidden dims padded to one full lane tile
N_LAYERS = 3                          # after folding the first two linears
MAX_BATCH_TILE = 512                  # ~85% of HBM roofline per measured tile sweep
WEIGHT_DTYPE = jnp.bfloat16           # MXU-native weights; accumulation stays f32


# ------------------------------- kernel ----------------------------------
def nbeats_identity_kernel(x_ref, w_ref, b_ref, back_ref, fore_ref):
    # x_ref    : [TB, INPUT_SIZE] f32   narrow input rows (no lane padding)
    # w_ref    : [3, 128, 128]    bf16  folded + zero-padded weights (x @ W layout)
    # b_ref    : [8, 128]         f32   rows 0..2 hold the three biases (rest zero)
    # back_ref : [TB, INPUT_SIZE] f32   IdentityBasis backcast
    # fore_ref : [TB, FORE_FLAT]  f32   IdentityBasis forecast (flat)
    x = x_ref[...].astype(WEIGHT_DTYPE)                                  # [TB, 8]
    # folded Linear0@Linear1 (no activation between them -> fold valid), + ReLU
    h = jnp.dot(x, w_ref[0, :INPUT_SIZE, :], preferred_element_type=jnp.float32)
    h = jnp.maximum(h + b_ref[0:1, :], 0.0)
    # Linear2 + ReLU
    h = jnp.dot(h.astype(WEIGHT_DTYPE), w_ref[1], preferred_element_type=jnp.float32)
    h = jnp.maximum(h + b_ref[1:2, :], 0.0)
    # Linear3 -> theta (only lanes < N_THETA are meaningful)
    theta = jnp.dot(h.astype(WEIGHT_DTYPE), w_ref[2],
                    preferred_element_type=jnp.float32) + b_ref[2:3, :]
    # IdentityBasis: split theta in-kernel -> two narrow, full-last-dim stores.
    # NOTE: bias adds above rely on implicit [1,128] broadcast; a stride-0
    # b_ref[pl.ds(k, TB, stride=0), :] read is a possible low-single-digit-% tweak.
    back_ref[...] = theta[:, :INPUT_SIZE].astype(back_ref.dtype)
    fore_ref[...] = theta[:, INPUT_SIZE:N_THETA].astype(fore_ref.dtype)


# ------------------------------- wrapper ----------------------------------
def pick_batch_tile(batch):
    """Adaptive rows-per-grid-step: 8 for tiny batches (f32 min sublane tile),
    else aim for >= 4 grid steps (so both v7x TensorCores get work), capped at
    MAX_BATCH_TILE rows (per-step overhead amortized; VMEM footprint < 2 MiB)."""
    if batch <= 8:
        return 8
    tb = -(-batch // 4)           # cdiv(batch, 4)
    tb = -(-tb // 8) * 8          # round up to the 8-row sublane tile
    return max(8, min(tb, MAX_BATCH_TILE))


def pack_params(params):
    """One-time host-side packing (hoisted out of the per-call path): fold
    Linear0 into Linear1 and pad into a bf16 [3,128,128] weight slab plus an
    f32 [8,128] bias slab.

    The W0@W1 fold is valid only because this block applies no activation
    between the first two Linears (see nbeats_theta_ref); drop it if your MLP
    puts an activation after the first Linear or if bit-parity is required.
    """
    (w0, b0), (w1, b1), (w2, b2), (w3, b3) = params
    w01 = w0 @ w1                  # [INPUT_SIZE, 32]
    b01 = b0 @ w1 + b1             # [1, 32]
    ws = [w01, w2, w3]
    bs = [b01, b2, b3]
    w_slab = jnp.zeros((N_LAYERS, LANES, LANES), jnp.float32)
    b_slab = jnp.zeros((8, LANES), jnp.float32)
    for i, (w, b) in enumerate(zip(ws, bs)):
        w_slab = w_slab.at[i, : w.shape[0], : w.shape[1]].set(w)
        b_slab = b_slab.at[i, : b.shape[1]].set(b[0])
    return w_slab.astype(WEIGHT_DTYPE), b_slab


@jax.jit
def nbeats_block(x, w_slab, b_slab):
    """x: [B, INPUT_SIZE] f32, prebuilt slabs ->
       (backcast [B, INPUT_SIZE], forecast [B, FORECAST_SIZE, OUT_FEATURES])."""
    assert DROPOUT_PROB == 0.0, "dropout > 0 not implemented (reference raises too)"
    batch, in_size = x.shape
    assert in_size == INPUT_SIZE

    tb = pick_batch_tile(batch)
    b_pad = pl.cdiv(batch, tb) * tb
    # Row-only zero padding of the narrow (B, 8) input; padded rows are explicit
    # zeros and sliced off below.
    x_pad = jnp.pad(x, ((0, b_pad - batch), (0, 0))) if b_pad != batch else x

    n_steps = b_pad // tb
    flops = 2 * b_pad * LANES * LANES * N_LAYERS
    bytes_accessed = (
        x_pad.size * x_pad.dtype.itemsize
        + n_steps * (w_slab.size * w_slab.dtype.itemsize
                     + b_slab.size * b_slab.dtype.itemsize)
        + b_pad * (INPUT_SIZE + FORE_FLAT) * 4)

    backcast, forecast_flat = pl.pallas_call(
        nbeats_identity_kernel,
        out_shape=(
            jax.ShapeDtypeStruct((b_pad, INPUT_SIZE), jnp.float32),
            jax.ShapeDtypeStruct((b_pad, FORE_FLAT), jnp.float32),
        ),
        grid=(n_steps,),
        in_specs=[
            pl.BlockSpec((tb, INPUT_SIZE), lambda i: (i, 0)),
            pl.BlockSpec((N_LAYERS, LANES, LANES), lambda i: (0, 0, 0)),
            pl.BlockSpec((8, LANES), lambda i: (0, 0)),
        ],
        out_specs=(
            pl.BlockSpec((tb, INPUT_SIZE), lambda i: (i, 0)),
            pl.BlockSpec((tb, FORE_FLAT), lambda i: (i, 0)),
        ),
        compiler_params=pltpu.CompilerParams(
            dimension_semantics=("parallel",)),
        cost_estimate=pl.CostEstimate(
            flops=flops, transcendentals=0, bytes_accessed=bytes_accessed),
    )(x_pad, w_slab, b_slab)

    backcast = backcast[:batch]
    forecast = forecast_flat[:batch].reshape(batch, -1, OUT_FEATURES)
    return backcast, forecast


# --------------------------- parameter setup ------------------------------
def init_params(key):
    """Deterministic init. Weight layout: [in_features, out_features] (x @ W)."""
    dims = [
        (INPUT_SIZE, MLP_UNITS[0][0]),
        (MLP_UNITS[0][0], MLP_UNITS[0][1]),
        (MLP_UNITS[1][0], MLP_UNITS[1][1]),
        (MLP_UNITS[-1][1], N_THETA),
    ]
    params = []
    for fan_in, fan_out in dims:
        key, kw, kb = jax.random.split(key, 3)
        scale = 1.0 / jnp.sqrt(jnp.float32(fan_in))
        w = jax.random.uniform(kw, (fan_in, fan_out), jnp.float32, -scale, scale)
        b = jax.random.uniform(kb, (1, fan_out), jnp.float32, -scale, scale)
        params.append((w, b))
    return params


# ----------------------------- references ----------------------------------
def nbeats_theta_ref(x, params):
    """Pure f32 reference for the theta-producing MLP. No activation between
    Linear0 and Linear1 (which is what makes the host-side fold valid)."""
    (w0, b0), (w1, b1), (w2, b2), (w3, b3) = params
    h = x @ w0 + b0
    h = jnp.maximum(h @ w1 + b1, 0.0)
    h = jnp.maximum(h @ w2 + b2, 0.0)
    return h @ w3 + b3


def identity_basis_ref(theta):
    """Exact IdentityBasis.forward semantics from the PyTorch spec."""
    backcast = theta[:, :INPUT_SIZE]
    forecast = theta[:, INPUT_SIZE:].reshape(theta.shape[0], -1, OUT_FEATURES)
    return backcast, forecast


def nbeats_theta_quantized_ref(x, w_slab, b_slab):
    """Plain-jnp replica of the kernel math (bf16 weights/activations, f32
    accumulation) for a tight numerical check of the Pallas kernel."""
    h = jnp.dot(x.astype(WEIGHT_DTYPE), w_slab[0, :INPUT_SIZE, :],
                preferred_element_type=jnp.float32)
    h = jnp.maximum(h + b_slab[0:1], 0.0)
    h = jnp.dot(h.astype(WEIGHT_DTYPE), w_slab[1], preferred_element_type=jnp.float32)
    h = jnp.maximum(h + b_slab[1:2], 0.0)
    theta = jnp.dot(h.astype(WEIGHT_DTYPE), w_slab[2],
                    preferred_element_type=jnp.float32) + b_slab[2:3]
    return theta[:, :N_THETA]


# --------------------------------- main ------------------------------------
if __name__ == "__main__":
    key = jax.random.PRNGKey(0)
    key, kx = jax.random.split(key)
    x = jax.random.normal(kx, (BATCH, INPUT_SIZE), jnp.float32)

    params = init_params(key)
    w_slab, b_slab = pack_params(params)       # packed ONCE, reused every call

    backcast, forecast = nbeats_block(x, w_slab, b_slab)
    jax.block_until_ready((backcast, forecast))

    assert backcast.shape == (BATCH, INPUT_SIZE)
    assert forecast.shape == (BATCH, FORECAST_SIZE, OUT_FEATURES)

    # 1) tight check against a plain-jnp replica of the exact kernel math
    theta_q = nbeats_theta_quantized_ref(x, w_slab, b_slab)
    back_q, fore_q = identity_basis_ref(theta_q)
    assert jnp.allclose(backcast, back_q, atol=2e-3, rtol=2e-3)
    assert jnp.allclose(forecast, fore_q, atol=2e-3, rtol=2e-3)

    # 2) loose semantic check against the unfolded f32 reference (bf16 weights
    #    + the L0@L1 fold reassociate f32 math, hence the wider tolerance)
    theta_f32 = nbeats_theta_ref(x, params)
    back_f, fore_f = identity_basis_ref(theta_f32)
    assert jnp.allclose(backcast, back_f, atol=5e-2, rtol=5e-2)
    assert jnp.allclose(forecast, fore_f, atol=5e-2, rtol=5e-2)

    print("KERNEL_OK")
</pallas_src>

<mosaic_0001>
module attributes {stable_mosaic.version = 11 : i64} {
  func.func @nbeats_identity_kernel(%arg0: i32, %arg1: memref<8x8xf32, #tpu.memory_space<vmem>>, %arg2: memref<3x128x128xbf16, #tpu.memory_space<vmem>>, %arg3: memref<8x128xf32, #tpu.memory_space<vmem>>, %arg4: memref<8x8xf32, #tpu.memory_space<vmem>>, %arg5: memref<8x4xf32, #tpu.memory_space<vmem>>) attributes {dimension_semantics = [#tpu.dimension_semantics<parallel>], iteration_bounds = array<i64: 1>, scalar_prefetch = 0 : i64, scratch_operands = 0 : i64, tpu.core_type = #tpu.core_type<tc>, window_params = [{transform_indices = @transform_0, window_bounds = array<i64: 8, 8>}, {pipeline_mode = #tpu.pipeline_mode<synchronous>, transform_indices = @transform_1, window_bounds = array<i64: 3, 128, 128>}, {pipeline_mode = #tpu.pipeline_mode<synchronous>, transform_indices = @transform_2, window_bounds = array<i64: 8, 128>}, {transform_indices = @transform_3, window_bounds = array<i64: 8, 8>}, {transform_indices = @transform_4, window_bounds = array<i64: 8, 4>}]} {
    %c0 = arith.constant 0 : index
    %c0_0 = arith.constant 0 : index
    %0 = vector.load %arg1[%c0, %c0_0] : memref<8x8xf32, #tpu.memory_space<vmem>>, vector<8x8xf32>
    %1 = arith.truncf %0 : vector<8x8xf32> to vector<8x8xbf16>
    %c0_1 = arith.constant 0 : index
    %c0_2 = arith.constant 0 : index
    %c0_3 = arith.constant 0 : index
    %2 = vector.load %arg2[%c0_1, %c0_2, %c0_3] : memref<3x128x128xbf16, #tpu.memory_space<vmem>>, vector<1x8x128xbf16>
    %3 = vector.shape_cast %2 : vector<1x8x128xbf16> to vector<8x128xbf16>
    %cst = arith.constant dense<0.000000e+00> : vector<8x128xf32>
    %4 = tpu.matmul %1, %3, %cst {dimension_numbers = #tpu.dot_dimension_numbers<[1], [0], [0], [1], [0, 0, 1, 1], [], []>} : vector<8x8xbf16>, vector<8x128xbf16>, vector<8x128xf32> -> vector<8x128xf32>
    %c0_4 = arith.constant 0 : index
    %c0_5 = arith.constant 0 : index
    %5 = vector.load %arg3[%c0_4, %c0_5] : memref<8x128xf32, #tpu.memory_space<vmem>>, vector<1x128xf32>
    %6 = vector.broadcast %5 : vector<1x128xf32> to vector<8x128xf32>
    %7 = arith.addf %4, %6 : vector<8x128xf32>
    %cst_6 = arith.constant 0.000000e+00 : f32
    %8 = vector.broadcast %cst_6 : f32 to vector<8x128xf32>
    %9 = arith.maximumf %7, %8 : vector<8x128xf32>
    %10 = arith.truncf %9 : vector<8x128xf32> to vector<8x128xbf16>
    %c1 = arith.constant 1 : index
    %c0_7 = arith.constant 0 : index
    %c0_8 = arith.constant 0 : index
    %11 = vector.load %arg2[%c1, %c0_7, %c0_8] : memref<3x128x128xbf16, #tpu.memory_space<vmem>>, vector<1x128x128xbf16>
    %12 = vector.shape_cast %11 : vector<1x128x128xbf16> to vector<128x128xbf16>
    %cst_9 = arith.constant dense<0.000000e+00> : vector<8x128xf32>
    %13 = tpu.matmul %10, %12, %cst_9 {dimension_numbers = #tpu.dot_dimension_numbers<[1], [0], [0], [1], [0, 0, 1, 1], [], []>} : vector<8x128xbf16>, vector<128x128xbf16>, vector<8x128xf32> -> vector<8x128xf32>
    %c1_10 = arith.constant 1 : index
    %c0_11 = arith.constant 0 : index
    %14 = vector.load %arg3[%c1_10, %c0_11] : memref<8x128xf32, #tpu.memory_space<vmem>>, vector<1x128xf32>
    %15 = vector.broadcast %14 : vector<1x128xf32> to vector<8x128xf32>
    %16 = arith.addf %13, %15 : vector<8x128xf32>
    %cst_12 = arith.constant 0.000000e+00 : f32
    %17 = vector.broadcast %cst_12 : f32 to vector<8x128xf32>
    %18 = arith.maximumf %16, %17 : vector<8x128xf32>
    %19 = arith.truncf %18 : vector<8x128xf32> to vector<8x128xbf16>
    %c2 = arith.constant 2 : index
    %c0_13 = arith.constant 0 : index
    %c0_14 = arith.constant 0 : index
    %20 = vector.load %arg2[%c2, %c0_13, %c0_14] : memref<3x128x128xbf16, #tpu.memory_space<vmem>>, vector<1x128x128xbf16>
    %21 = vector.shape_cast %20 : vector<1x128x128xbf16> to vector<128x128xbf16>
    %cst_15 = arith.constant dense<0.000000e+00> : vector<8x128xf32>
    %22 = tpu.matmul %19, %21, %cst_15 {dimension_numbers = #tpu.dot_dimension_numbers<[1], [0], [0], [1], [0, 0, 1, 1], [], []>} : vector<8x128xbf16>, vector<128x128xbf16>, vector<8x128xf32> -> vector<8x128xf32>
    %c2_16 = arith.constant 2 : index
    %c0_17 = arith.constant 0 : index
    %23 = vector.load %arg3[%c2_16, %c0_17] : memref<8x128xf32, #tpu.memory_space<vmem>>, vector<1x128xf32>
    %24 = vector.broadcast %23 : vector<1x128xf32> to vector<8x128xf32>
    %25 = arith.addf %22, %24 : vector<8x128xf32>
    %26 = vector.extract_strided_slice %25 {offsets = [0, 0], sizes = [8, 8], strides = [1, 1]} : vector<8x128xf32> to vector<8x8xf32>
    %c0_18 = arith.constant 0 : index
    %c0_19 = arith.constant 0 : index
    %27 = vector.load %arg4[%c0_18, %c0_19] : memref<8x8xf32, #tpu.memory_space<vmem>>, vector<8x8xf32>
    tpu.vector_store %arg4[%c0_18, %c0_19], %26 {strides = array<i32>} : memref<8x8xf32, #tpu.memory_space<vmem>>, vector<8x8xf32>,
    %28 = vector.extract_strided_slice %25 {offsets = [0, 8], sizes = [8, 4], strides = [1, 1]} : vector<8x128xf32> to vector<8x4xf32>
    %c0_20 = arith.constant 0 : index
    %c0_21 = arith.constant 0 : index
    %29 = vector.load %arg5[%c0_20, %c0_21] : memref<8x4xf32, #tpu.memory_space<vmem>>, vector<8x4xf32>
    tpu.vector_store %arg5[%c0_20, %c0_21], %28 {strides = array<i32>} : memref<8x4xf32, #tpu.memory_space<vmem>>, vector<8x4xf32>,
    return
  }
  func.func @transform_0(%arg0: i32) -> (i32, i32) {
    %c0_i32 = arith.constant 0 : i32
    %c0_i32_0 = arith.constant 0 : i32
    return %arg0, %c0_i32 : i32, i32
  }
  func.func @transform_1(%arg0: i32) -> (i32, i32, i32) {
    %c0_i32 = arith.constant 0 : i32
    %c0_i32_0 = arith.constant 0 : i32
    %c0_i32_1 = arith.constant 0 : i32
    %c0_i32_2 = arith.constant 0 : i32
    return %c0_i32, %c0_i32_0, %c0_i32_1 : i32, i32, i32
  }
  func.func @transform_2(%arg0: i32) -> (i32, i32) {
    %c0_i32 = arith.constant 0 : i32
    %c0_i32_0 = arith.constant 0 : i32
    %c0_i32_1 = arith.constant 0 : i32
    return %c0_i32, %c0_i32_0 : i32, i32
  }
  func.func @transform_3(%arg0: i32) -> (i32, i32) {
    %c0_i32 = arith.constant 0 : i32
    %c0_i32_0 = arith.constant 0 : i32
    return %arg0, %c0_i32 : i32, i32
  }
  func.func @transform_4(%arg0: i32) -> (i32, i32) {
    %c0_i32 = arith.constant 0 : i32
    %c0_i32_0 = arith.constant 0 : i32
    return %arg0, %c0_i32 : i32, i32
  }
}

</mosaic_0001>

<bundles_post_ra>
// kernel: nbeats_block.1
= control target key start
LH: loop header
LB: loop body
LE: loop exit
PB: predicated region body
PF: predicated region fallthrough
CT: control target
= control target key end

     0   :  { %10 = vsyncpa [#allocation3], 0  ;;  %s633_s0 = inlined_call_operand.hbm [shape: f32[8,8], index: 0, kind: input, shape index: {}]   ;;  %s634_s1 = inlined_call_operand.hbm [shape: bf16[3,128,128], index: 1, kind: input, shape index: {}]   ;;  %s635_s2 = inlined_call_operand.hbm [shape: f32[8,128], index: 2, kind: input, shape index: {}]   ;;  %s636_s3 = inlined_call_operand.hbm [shape: f32[8,8], index: 3, kind: output, shape index: {0}]   ;;  %s637_s4 = inlined_call_operand.vmem [shape: f32[8,4], index: 4, kind: output, shape index: {1}]  }
   0x1   :  { %11 = vsyncpa [#allocation6], 0 }
   0x2   :  { %12 = vsyncpa [#allocation4], 0  ;;  %s559_s15 = smov [#allocation5]  }
   0x3   :  { %s28_s16 = sshll.u32 %s559_s15, 4  ;;  %s29_s16 = int_to_ptr.vmem [resolvable:$true] %s28_s16 }
   0x4   :  { %s481_s17 = scalar_lea.vmem %s29_s16, 3072  ;;  %p486_p1 = scmp.lt.s32.totalorder %s29_s16, %s29_s16 }
   0x5   :  { %p482_p0 = scmp.ne.s32.totalorder %s29_s16, %s481_s17  ;;  %p487_p2 = scmp.lt.s32.totalorder %s481_s17, %s481_s17 }
   0x7   :  { %p488_p3 = por %p487_p2, %p486_p1 }
   0x9   :  { %p489_p4 = pnand %p488_p3, %p482_p0 }
   0xb   :  { %492 = shalt.err (!%p489_p4)
}
   0xc   :  { %s560_s18 = smov 64   ;;  %s561_s19 = smov 4  }
   0xd   :  { %34 = dma.hbm_to_vmem [thread:$0]  %s634_s1, 3072, %s29_s16, [#allocation6], %s560_s18, %s560_s18, %s561_s19  }
   0xe   :  { %s562_s22 = smov [#allocation2]   ;;  %s563_s24 = smov [#allocation7]  }
   0xf   :  { %s19_s23 = sshll.u32 %s562_s22, 4  ;;  %s41_s25 = sshll.u32 %s563_s24, 4  ;;  %s20_s23 = int_to_ptr.vmem [resolvable:$true] %s19_s23  ;;  %s42_s25 = int_to_ptr.vmem [resolvable:$true] %s41_s25 }
  0x10   :  { %s501_s26 = scalar_lea.vmem %s20_s23, 128  ;;  %p506_p6 = scmp.lt.s32.totalorder %s20_s23, %s20_s23 }
  0x11   :  { %p502_p5 = scmp.ne.s32.totalorder %s20_s23, %s501_s26  ;;  %p507_p7 = scmp.lt.s32.totalorder %s501_s26, %s501_s26 }
  0x13   :  { %p508_p8 = por %p507_p7, %p506_p6 }
  0x15   :  { %p509_p9 = pnand %p508_p8, %p502_p5 }
  0x17   :  { %512 = shalt.err (!%p509_p9)
}
  0x18   :  { %22 = dma.hbm_to_vmem [thread:$0]  %s633_s0, 128, %s20_s23, [#allocation3]  }
  0x19   :  { %s521_s29 = scalar_lea.vmem %s42_s25, 128  ;;  %p526_p11 = scmp.lt.s32.totalorder %s42_s25, %s42_s25 }
  0x1a   :  { %p522_p10 = scmp.ne.s32.totalorder %s42_s25, %s521_s29  ;;  %p527_p12 = scmp.lt.s32.totalorder %s521_s29, %s521_s29 }
  0x1c   :  { %p528_p13 = por %p527_p12, %p526_p11 }
  0x1e   :  { %p529_p0 = pnand %p528_p13, %p522_p10 }
  0x20   :  { %532 = shalt.err (!%p529_p0)
}
  0x21   :  { %44 = dma.hbm_to_vmem [thread:$0]  %s635_s2, 128, %s42_s25, [#allocation6]  }
  0x22   :  { %553 = dma.done.wait [#allocation3], 128  }
  0x23   :  { %554 = vsyncadd [#allocation3], 4294967168 }
  0x24   :  { %555 = dma.done.wait [#allocation6], 3200  }
  0x25   :  { %556 = vsyncadd [#allocation6], 4294964096  ;;  %v564_v0 = vmov 0.0   ;;  %vm565_vm0 = vmmov 0   ;;  %vm67_vm1 = vcmask 1043456   ;;  %v55_v2 = vld [vmem:[#allocation2] sm:$0xff] }
  0x26   :  { %402 = vmatprep.subr.bf16.mxu0 %v564_v0  ;;  %404 = vmatprep.mubr.msk.bf16.mxu0 %vm565_vm0, %v564_v0  ;;  %v57_v1 = vld [vmem:[#allocation5] sm:$0xf]  ;;  %v56_v4 = vpack.c.bf16 %v55_v2, %v55_v2  ;;  %v457_v5 = vld [vmem:[#allocation5 + $0x78] sm:$0xff]   ;;  %vm63_vm2 = vcmask 64512   ;;  %v458_v6 = vld [vmem:[#allocation5 + $0x70] sm:$0xff]   ;;  %s566_s0 = smov [#allocation8]  }
  0x27   :  { %408 = vmatprep.subr.bf16.mxu1 %v564_v0  ;;  %424 = vmatprep.mubr.msk.bf16.mxu1 %vm565_vm0, %v564_v0  ;;  %v69_v3 = vsel %vm67_vm1, %v57_v1, 0  ;;  %v459_v7 = vld [vmem:[#allocation5 + $0x68] sm:$0xff]   ;;  %v460_v8 = vld [vmem:[#allocation5 + $0x60] sm:$0xff]   ;;  %v461_v9 = vld [vmem:[#allocation5 + $0x58] sm:$0xff]   ;;  %s348_s2 = sshll.u32 %s566_s0, 4  ;;  %s567_s5 = smov 120   ;;  %s349_s2 = int_to_ptr.vmem [resolvable:$true] %s348_s2 }
  0x28   :  { %403 = vmatpush3.bf16.msra.mxu0 %v69_v3  ;;  %409 = vmatpush3.bf16.msra.mxu1 %v457_v5  ;;  %v462_v10 = vld [vmem:[#allocation5 + $0x50] sm:$0xff]   ;;  %v463_v11 = vld [vmem:[#allocation5 + $0x48] sm:$0xff]   ;;  %v464_v12 = vld [vmem:[#allocation5 + $0x40] sm:$0xff]   ;;  %s533_s6 = scalar_lea.vmem %s349_s2, 128  ;;  %p538_p2 = scmp.lt.s32.totalorder %s349_s2, %s349_s2 }
  0x29   :  { %428 = vmatprep.subr.bf16.mxu0 %v564_v0  ;;  %410 = vmatprep.subr.bf16.mxu1 %v564_v0  ;;  %v465_v13 = vld [vmem:[#allocation5 + $0xb8] sm:$0xff]   ;;  %v466_v14 = vld [vmem:[#allocation5 + $0xb0] sm:$0xff]   ;;  %v467_v15 = vld [vmem:[#allocation5 + $0xa8] sm:$0xff]   ;;  %p534_p1 = scmp.ne.s32.totalorder %s349_s2, %s533_s6  ;;  %p539_p3 = scmp.lt.s32.totalorder %s533_s6, %s533_s6 }
  0x2a   :  { %v468_v16 = vld [vmem:[#allocation5 + $0xa0] sm:$0xff]   ;;  %v469_v17 = vld [vmem:[#allocation5 + $0x98] sm:$0xff]   ;;  %v470_v18 = vld [vmem:[#allocation5 + $0x90] sm:$0xff]  }
  0x2b   :  { %405 = vmatmul.mubr.msk.bf16.vlgmr.msra.gmra.mxu0 %vm63_vm2, %v56_v4  ;;  %v362_v19 = vld [vmem:[#allocation7] ss:$0 sm:$0xff]  ;;  %v471_v27 = vld [vmem:[#allocation5 + $0x88] sm:$0xff]   ;;  %v364_v29 = vld [vmem:[#allocation7 + $0x1] ss:$0 sm:$0xff]  ;;  %p540_p4 = por %p539_p3, %p538_p2 }
  0x2c   :  { %444 = vmatprep.mubr.msk.bf16.mxu0 %vm565_vm0, %v564_v0  ;;  %411 = vmatpush3.bf16.msra.mxu1 %v458_v6  ;;  %v472_v28 = vld [vmem:[#allocation5 + $0x80] sm:$0xff]  }
  0x2d   :  { %412 = vmatprep.subr.bf16.mxu1 %v564_v0  ;;  %429 = vmatpush3.bf16.msra.mxu0 %v465_v13  ;;  %v373_v37 = vld [vmem:[#allocation7 + $0x2] ss:$0 sm:$0xff]  ;;  %p541_p5 = pnand %p540_p4, %p534_p1 }
  0x2e   :  { %430 = vmatprep.subr.bf16.mxu0 %v564_v0 }
  0x30   :  { %413 = vmatpush3.bf16.msra.mxu1 %v459_v7 }
  0x31   :  { %414 = vmatprep.subr.bf16.mxu1 %v564_v0  ;;  %431 = vmatpush3.bf16.msra.mxu0 %v466_v14 }
  0x32   :  { %432 = vmatprep.subr.bf16.mxu0 %v564_v0 }
  0x34   :  { %415 = vmatpush3.bf16.msra.mxu1 %v460_v8 }
  0x35   :  { %416 = vmatprep.subr.bf16.mxu1 %v564_v0  ;;  %433 = vmatpush3.bf16.msra.mxu0 %v467_v15 }
  0x36   :  { %434 = vmatprep.subr.bf16.mxu0 %v564_v0 }
  0x38   :  { %417 = vmatpush3.bf16.msra.mxu1 %v461_v9 }
  0x39   :  { %418 = vmatprep.subr.bf16.mxu1 %v564_v0  ;;  %435 = vmatpush3.bf16.msra.mxu0 %v468_v16 }
  0x3a   :  { %436 = vmatprep.subr.bf16.mxu0 %v564_v0 }
  0x3c   :  { %419 = vmatpush3.bf16.msra.mxu1 %v462_v10 }
  0x3d   :  { %420 = vmatprep.subr.bf16.mxu1 %v564_v0  ;;  %437 = vmatpush3.bf16.msra.mxu0 %v469_v17 }
  0x3e   :  { %438 = vmatprep.subr.bf16.mxu0 %v564_v0 }
  0x40   :  { %421 = vmatpush3.bf16.msra.mxu1 %v463_v11 }
  0x41   :  { %422 = vmatprep.subr.bf16.mxu1 %v564_v0  ;;  %439 = vmatpush3.bf16.msra.mxu0 %v470_v18 }
  0x42   :  { %440 = vmatprep.subr.bf16.mxu0 %v564_v0 }
  0x44   :  { %423 = vmatpush3.bf16.msra.mxu1 %v464_v12 }
  0x45   :  { %441 = vmatpush3.bf16.msra.mxu0 %v471_v27 }
  0x46   :  { %442 = vmatprep.subr.bf16.mxu0 %v564_v0 }
  0x49   :  { %443 = vmatpush3.bf16.msra.mxu0 %v472_v28 }
  0xeb   :  { %v105_v20 = vpop.f32.mrf.mxu0 }
  0xec   :  { %v106_v21 = vadd.f32 %v362_v19, %v105_v20 }
  0xed   :  { %v406_v22 = vpop.f32.mrf.mxu0 }
  0xee   :  { %v111_v23 = vmax.f32 %v106_v21, 0.0 }
  0xef   :  { %v108_v24 = vpop.f32.mrf.mxu0 }
  0xf0   :  { %v112_v25 = vpack.c.bf16 %v111_v23, %v111_v23 }
  0xf1   :  { %v407_v26 = vpop.f32.mrf.mxu0 }
  0xf2   :  { %425 = vmatmul.mubr.bf16.vlgmr.msra.gmra.mxu1 %v112_v25 }
 0x1b2   :  { %v217_v30 = vpop.f32.mrf.mxu1 }
 0x1b3   :  { %v218_v31 = vadd.f32 %v364_v29, %v217_v30 }
 0x1b4   :  { %v426_v32 = vpop.f32.mrf.mxu1 }
 0x1b5   :  { %v223_v33 = vmax.f32 %v218_v31, 0.0 }
 0x1b6   :  { %v220_v34 = vpop.f32.mrf.mxu1 }
 0x1b7   :  { %v224_v35 = vpack.c.bf16 %v223_v33, %v223_v33 }
 0x1b8   :  { %v427_v36 = vpop.f32.mrf.mxu1 }
 0x1b9   :  { %445 = vmatmul.mubr.bf16.vlgmr.msra.gmra.mxu0 %v224_v35 }
 0x279   :  { %v329_v38 = vpop.f32.mrf.mxu0 }
 0x27a   :  { %v330_v39 = vadd.f32 %v373_v37, %v329_v38 }
 0x27b   :  { %v446_v40 = vpop.f32.mrf.mxu0 }
 0x27c   :  { %335 = vst.msk [vmem:[#allocation8] sm:$0xff] %vm63_vm2, %v330_v39  ;;  %337 = vrot.lane.b32.xlu0 %v330_v39, %s567_s5 }
 0x27d   :  { %v332_v41 = vpop.f32.mrf.mxu0 }
 0x27e   :  { %544 = shalt.err (!%p541_p5)
}
 0x27f   :  { %351 = dma.vmem_to_hbm [thread:$0]  %s349_s2, 128, %s636_s3, [#allocation4]   ;;  %v447_v42 = vpop.f32.mrf.mxu0  ;;  %vm340_vm3 = vcmask 31744  }
 0x2ee   :  { %v338_v43 = vpop.permute.xlu0 %337 }
 0x2ef   :  { %341 = vst.msk [vmem:[%s637_s4] sm:$0xff] %vm340_vm3, %v338_v43 }
 0x2f0   :  { %557 = dma.done.wait [#allocation4], 128  }
 0x2f1   :  { %558 = vsyncadd [#allocation4], 4294967168 }
 0x2f2   :  { %359 = vsyncpa [#allocation3], 1 }
 0x2f3   :  { %360 = vsyncpa [#allocation6], 1 }
 0x2f4   :  { %361 = vsyncpa [#allocation4], 1 }

</bundles_post_ra>
